<compile_context>
chip_gen: v5e
topology: v5e:2x2
jax: 0.10.0
libtpu: 0.0.40
codegen_flags: <defaults>
</compile_context>

<pallas_src>
import functools
import math

import jax
import jax.numpy as jnp
from jax.experimental import pallas as pl
from jax.experimental.pallas import tpu as pltpu

_LANE = 128
_VMEM_INPUT_BUDGET = 40 * 1024 * 1024   # bytes for double-buffered inputs


def _dice_sums_kernel(logits_ref, trues_ref, out_ref,
                      acc_i, acc_p, acc_t, *,
                      logit_thr, n_valid, tile_rows, chunks_per_split):
    """Accumulate lane-dense per-sample partial sums.

    logits_ref: (1, TR, 128) native-dtype logits tile
    trues_ref : (1, TR, 128) targets tile
    out_ref   : (1, 1, 3, 128) f32 output block (written at the last chunk)
    acc_*     : (8, 128) f32 VMEM scratch accumulators (inter / preds / trues)
    """
    si = pl.program_id(1)
    ki = pl.program_id(2)

    @pl.when(ki == 0)
    def _():
        acc_i[...] = jnp.zeros_like(acc_i)
        acc_p[...] = jnp.zeros_like(acc_p)
        acc_t[...] = jnp.zeros_like(acc_t)

    chunk = si * chunks_per_split + ki
    elem0 = chunk * (tile_rows * _LANE)      # first flat element of this tile
    thr = jnp.float32(logit_thr)
    nsub = tile_rows // 8

    def accumulate(mask):
        x32 = logits_ref[...].astype(jnp.float32)    # (1, TR, 128)
        t32 = trues_ref[...].astype(jnp.float32)
        # hard prediction: sigmoid(x) > threshold  <=>  x > logit(threshold)
        pm = x32 > thr
        if mask is not None:
            pm = jnp.logical_and(pm, mask)
            t32 = jnp.where(mask, t32, 0.0)
        preds = jnp.where(pm, 1.0, 0.0)
        inter = jnp.where(pm, t32, 0.0)
        # elementwise vreg adds only (defer the cross-sublane reduce)
        acc_i[...] += jnp.sum(inter.reshape(nsub, 8, _LANE), axis=0)
        acc_p[...] += jnp.sum(preds.reshape(nsub, 8, _LANE), axis=0)
        acc_t[...] += jnp.sum(t32.reshape(nsub, 8, _LANE), axis=0)

    is_full = (elem0 + tile_rows * _LANE) <= n_valid

    @pl.when(is_full)                         # hot path: no masking
    def _():
        accumulate(None)

    @pl.when(jnp.logical_not(is_full))        # cold path: ragged tail chunk
    def _():
        ridx = jax.lax.broadcasted_iota(jnp.int32, (1, tile_rows, _LANE), 1)
        lidx = jax.lax.broadcasted_iota(jnp.int32, (1, tile_rows, _LANE), 2)
        local = ridx * _LANE + lidx
        mask = local < (n_valid - elem0)
        accumulate(mask)

    @pl.when(ki == pl.num_programs(2) - 1)
    def _():
        inter = jnp.sum(acc_i[...], axis=0)   # (128,) one-time XLU reduce
        psum = jnp.sum(acc_p[...], axis=0)
        tsum = jnp.sum(acc_t[...], axis=0)
        out_ref[...] = jnp.stack([inter, psum, tsum],
                                 axis=0).reshape(out_ref.shape)


def _packing_rows(dtype):
    isz = jnp.dtype(dtype).itemsize
    return 8 * max(1, 4 // isz)


def hard_dice_coef(inputs, target, *, class_id=None, threshold=0.5,
                   smooth=0.001, target_rows=8192):
    """JAX/Pallas equivalent of HardDiceCoef.forward.

    inputs, target: (B, C, H, W) arrays (NCHW).  Returns a scalar float32.
    """
    if class_id is not None:
        inputs = inputs[:, class_id]
        target = target[:, class_id]

    b = inputs.shape[0]
    logits = inputs.reshape(b, -1)   # native dtype, no HBM upcast
    trues = target.reshape(b, -1)
    n = logits.shape[1]              # valid elements per sample

    # Tiny pad to a multiple of 128 only when needed (values are irrelevant:
    # the padded tail always falls in the masked branch of the kernel).
    n_pad = -(-n // _LANE) * _LANE
    if n_pad != n:
        logits = jnp.pad(logits, ((0, 0), (0, n_pad - n)))
        trues = jnp.pad(trues, ((0, 0), (0, n_pad - n)))
    r = n_pad // _LANE               # rows of 128 lanes

    # Tile height: sublane-packing aligned, capped by VMEM buffer budget.
    isz_x = jnp.dtype(logits.dtype).itemsize
    isz_t = jnp.dtype(trues.dtype).itemsize
    mult = max(_packing_rows(logits.dtype), _packing_rows(trues.dtype))
    bytes_per_row = _LANE * (isz_x + isz_t)
    tr_cap = max(mult, (_VMEM_INPUT_BUDGET // (2 * bytes_per_row)) // mult * mult)
    tr = min(max(target_rows, mult), tr_cap)
    tr = max(mult, (tr // mult) * mult)
    r_up = -(-r // mult) * mult
    tr = min(tr, r_up)

    logits = logits.reshape(b, r, _LANE)
    trues = trues.reshape(b, r, _LANE)
    num_chunks = -(-r // tr)

    # Split the reduction axis when B == 1 so both v7x TensorCores get work.
    nsplit = 2 if (b == 1 and num_chunks >= 2 and num_chunks % 2 == 0) else 1
    cps = num_chunks // nsplit

    # Threshold -> logit-space constant (f32 compare in-kernel).
    if threshold <= 0.0:
        logit_thr = -float("inf")
    elif threshold >= 1.0:
        logit_thr = float("inf")
    else:
        logit_thr = math.log(threshold / (1.0 - threshold))

    kernel = functools.partial(
        _dice_sums_kernel,
        logit_thr=logit_thr, n_valid=n, tile_rows=tr, chunks_per_split=cps)

    buffers_bytes = 2 * tr * bytes_per_row            # double-buffered inputs
    vmem_limit = int(min(48 * 1024 * 1024,
                         max(32 * 1024 * 1024, buffers_bytes + 2 * 1024 * 1024)))

    sums = pl.pallas_call(
        kernel,
        out_shape=jax.ShapeDtypeStruct((b, nsplit, 3, _LANE), jnp.float32),
        grid_spec=pltpu.PrefetchScalarGridSpec(
            num_scalar_prefetch=0,
            grid=(b, nsplit, cps),                     # reduction axis last
            in_specs=[
                pl.BlockSpec((1, tr, _LANE),
                             lambda bi, si, ki: (bi, si * cps + ki, 0)),
                pl.BlockSpec((1, tr, _LANE),
                             lambda bi, si, ki: (bi, si * cps + ki, 0)),
            ],
            out_specs=pl.BlockSpec((1, 1, 3, _LANE),
                                   lambda bi, si, ki: (bi, si, 0, 0)),
            scratch_shapes=[pltpu.VMEM((8, _LANE), jnp.float32),
                            pltpu.VMEM((8, _LANE), jnp.float32),
                            pltpu.VMEM((8, _LANE), jnp.float32)],
        ),
        compiler_params=pltpu.CompilerParams(
            dimension_semantics=("parallel", "parallel", "arbitrary"),
            vmem_limit_bytes=vmem_limit),
        cost_estimate=pl.CostEstimate(
            flops=6 * b * n, transcendentals=0,
            bytes_accessed=logits.nbytes + trues.nbytes
                           + b * nsplit * 3 * _LANE * 4),
    )(logits, trues)

    totals = jnp.sum(sums, axis=(1, 3))               # (B, 3)
    inter, psum, tsum = totals[:, 0], totals[:, 1], totals[:, 2]
    dice = jnp.mean((2.0 * inter + smooth) / (psum + tsum + smooth))
    return dice


def _reference(inputs, target, class_id=None, threshold=0.5, smooth=0.001):
    """Pure-JAX reference mirroring the PyTorch module."""
    if class_id is not None:
        inputs = inputs[:, class_id]
        target = target[:, class_id]
    b = inputs.shape[0]
    preds = (jax.nn.sigmoid(inputs.astype(jnp.float32)) > threshold)
    preds = preds.astype(jnp.float32).reshape(b, -1)
    trues = target.reshape(b, -1).astype(jnp.float32)
    inter = jnp.sum(preds * trues, axis=1)
    return jnp.mean((2.0 * inter + smooth) /
                    (preds.sum(axis=1) + trues.sum(axis=1) + smooth))


if __name__ == "__main__":
    key = jax.random.PRNGKey(0)
    k1, k2 = jax.random.split(key)

    # 1) basic NCHW case
    B, C, H, W = 2, 4, 16, 16
    x = jax.random.normal(k1, (B, C, H, W), dtype=jnp.float32)
    y = (jax.random.uniform(k2, (B, C, H, W)) > 0.5).astype(jnp.float32)
    dice = jax.block_until_ready(hard_dice_coef(x, y, threshold=0.5))
    ref = jax.block_until_ready(_reference(x, y))
    assert jnp.allclose(dice, ref, atol=1e-5, rtol=1e-5), (dice, ref)

    # 2) class_id path + ragged N (not a multiple of 128 -> tiny pad + mask)
    x2 = jax.random.normal(k1, (B, C, 9, 13), dtype=jnp.float32)
    y2 = (jax.random.uniform(k2, (B, C, 9, 13)) > 0.5).astype(jnp.float32)
    d2 = jax.block_until_ready(hard_dice_coef(x2, y2, class_id=1))
    r2 = jax.block_until_ready(_reference(x2, y2, class_id=1))
    assert jnp.allclose(d2, r2, atol=1e-5, rtol=1e-5), (d2, r2)

    # 3) B == 1 with multiple chunks -> exercises the split "parallel" axis
    x3 = jax.random.normal(k1, (1, 4, 8, 64), dtype=jnp.float32)
    y3 = (jax.random.uniform(k2, (1, 4, 8, 64)) > 0.5).astype(jnp.float32)
    d3 = jax.block_until_ready(hard_dice_coef(x3, y3, target_rows=8))
    r3 = jax.block_until_ready(_reference(x3, y3))
    assert jnp.allclose(d3, r3, atol=1e-5, rtol=1e-5), (d3, r3)

    # 4) partial last chunk (rows not a multiple of the tile) + bf16 logits
    x4 = jax.random.normal(k1, (1, 1, 24, 128), dtype=jnp.bfloat16)
    y4 = (jax.random.uniform(k2, (1, 1, 24, 128)) > 0.5).astype(jnp.float32)
    d4 = jax.block_until_ready(hard_dice_coef(x4, y4, target_rows=16))
    r4 = jax.block_until_ready(_reference(x4, y4))
    assert jnp.allclose(d4, r4, atol=1e-5, rtol=1e-5), (d4, r4)

    print("KERNEL_OK")
</pallas_src>

<mosaic_0001>
module attributes {stable_mosaic.version = 11 : i64} {
  func.func @_dice_sums_kernel(%arg0: i32, %arg1: i32, %arg2: i32, %arg3: memref<1x8x128xf32, #tpu.memory_space<vmem>>, %arg4: memref<1x8x128xf32, #tpu.memory_space<vmem>>, %arg5: memref<1x1x3x128xf32, #tpu.memory_space<vmem>>, %arg6: memref<8x128xf32, #tpu.memory_space<vmem>>, %arg7: memref<8x128xf32, #tpu.memory_space<vmem>>, %arg8: memref<8x128xf32, #tpu.memory_space<vmem>>) attributes {dimension_semantics = [#tpu.dimension_semantics<parallel>, #tpu.dimension_semantics<parallel>, #tpu.dimension_semantics<arbitrary>], iteration_bounds = array<i64: 2, 1, 1>, scalar_prefetch = 0 : i64, scratch_operands = 3 : i64, tpu.core_type = #tpu.core_type<tc>, window_params = [{transform_indices = @transform_0, window_bounds = array<i64: 1, 8, 128>}, {transform_indices = @transform_1, window_bounds = array<i64: 1, 8, 128>}, {transform_indices = @transform_2, window_bounds = array<i64: 1, 1, 3, 128>}]} {
    %c0_i32 = arith.constant 0 : i32
    %0 = arith.cmpi eq, %arg2, %c0_i32 : i32
    %1 = arith.extui %0 : i1 to i32
    %c0_i32_0 = arith.constant 0 : i32
    %2 = arith.cmpi ne, %1, %c0_i32_0 : i32
    scf.if %2 {
      %cst_8 = arith.constant 0.000000e+00 : f32
      %16 = vector.broadcast %cst_8 : f32 to vector<8x128xf32>
      %c0 = arith.constant 0 : index
      %c0_9 = arith.constant 0 : index
      %17 = vector.load %arg6[%c0, %c0_9] : memref<8x128xf32, #tpu.memory_space<vmem>>, vector<8x128xf32>
      tpu.vector_store %arg6[%c0, %c0_9], %16 {strides = array<i32>} : memref<8x128xf32, #tpu.memory_space<vmem>>, vector<8x128xf32>,
      %cst_10 = arith.constant 0.000000e+00 : f32
      %18 = vector.broadcast %cst_10 : f32 to vector<8x128xf32>
      %c0_11 = arith.constant 0 : index
      %c0_12 = arith.constant 0 : index
      %19 = vector.load %arg7[%c0_11, %c0_12] : memref<8x128xf32, #tpu.memory_space<vmem>>, vector<8x128xf32>
      tpu.vector_store %arg7[%c0_11, %c0_12], %18 {strides = array<i32>} : memref<8x128xf32, #tpu.memory_space<vmem>>, vector<8x128xf32>,
      %cst_13 = arith.constant 0.000000e+00 : f32
      %20 = vector.broadcast %cst_13 : f32 to vector<8x128xf32>
      %c0_14 = arith.constant 0 : index
      %c0_15 = arith.constant 0 : index
      %21 = vector.load %arg8[%c0_14, %c0_15] : memref<8x128xf32, #tpu.memory_space<vmem>>, vector<8x128xf32>
      tpu.vector_store %arg8[%c0_14, %c0_15], %20 {strides = array<i32>} : memref<8x128xf32, #tpu.memory_space<vmem>>, vector<8x128xf32>,
    } else {
    }
    %c1_i32 = arith.constant 1 : i32
    %3 = arith.muli %arg1, %c1_i32 : i32
    %4 = arith.addi %3, %arg2 : i32
    %c1024_i32 = arith.constant 1024 : i32
    %5 = arith.muli %4, %c1024_i32 : i32
    %c1024_i32_1 = arith.constant 1024 : i32
    %6 = arith.addi %5, %c1024_i32_1 : i32
    %c1024_i32_2 = arith.constant 1024 : i32
    %7 = arith.cmpi sle, %6, %c1024_i32_2 : i32
    %8 = arith.extui %7 : i1 to i32
    %cst = arith.constant 0.000000e+00 : f32
    %c0_i32_3 = arith.constant 0 : i32
    %9 = arith.cmpi ne, %8, %c0_i32_3 : i32
    scf.if %9 {
      %c0 = arith.constant 0 : index
      %c0_8 = arith.constant 0 : index
      %c0_9 = arith.constant 0 : index
      %16 = vector.load %arg3[%c0, %c0_8, %c0_9] : memref<1x8x128xf32, #tpu.memory_space<vmem>>, vector<1x8x128xf32>
      %c0_10 = arith.constant 0 : index
      %c0_11 = arith.constant 0 : index
      %c0_12 = arith.constant 0 : index
      %17 = vector.load %arg4[%c0_10, %c0_11, %c0_12] : memref<1x8x128xf32, #tpu.memory_space<vmem>>, vector<1x8x128xf32>
      %18 = vector.broadcast %cst : f32 to vector<1x8x128xf32>
      %19 = arith.cmpf ogt, %16, %18 : vector<1x8x128xf32>
      %cst_13 = arith.constant 1.000000e+00 : f32
      %cst_14 = arith.constant 0.000000e+00 : f32
      %20 = vector.broadcast %cst_13 : f32 to vector<1x8x128xf32>
      %21 = vector.broadcast %cst_14 : f32 to vector<1x8x128xf32>
      %22 = arith.select %19, %20, %21 : vector<1x8x128xi1>, vector<1x8x128xf32>
      %cst_15 = arith.constant 0.000000e+00 : f32
      %23 = vector.broadcast %cst_15 : f32 to vector<1x8x128xf32>
      %24 = arith.select %19, %17, %23 : vector<1x8x128xi1>, vector<1x8x128xf32>
      %c0_16 = arith.constant 0 : index
      %c0_17 = arith.constant 0 : index
      %25 = vector.load %arg6[%c0_16, %c0_17] : memref<8x128xf32, #tpu.memory_space<vmem>>, vector<8x128xf32>
      %cst_18 = arith.constant dense<0.000000e+00> : vector<8x128xf32>
      %26 = vector.multi_reduction <add>, %24, %cst_18 [0] : vector<1x8x128xf32> to vector<8x128xf32>
      %27 = arith.addf %25, %26 : vector<8x128xf32>
      %c0_19 = arith.constant 0 : index
      %c0_20 = arith.constant 0 : index
      %28 = vector.load %arg6[%c0_19, %c0_20] : memref<8x128xf32, #tpu.memory_space<vmem>>, vector<8x128xf32>
      tpu.vector_store %arg6[%c0_19, %c0_20], %27 {strides = array<i32>} : memref<8x128xf32, #tpu.memory_space<vmem>>, vector<8x128xf32>,
      %c0_21 = arith.constant 0 : index
      %c0_22 = arith.constant 0 : index
      %29 = vector.load %arg7[%c0_21, %c0_22] : memref<8x128xf32, #tpu.memory_space<vmem>>, vector<8x128xf32>
      %cst_23 = arith.constant dense<0.000000e+00> : vector<8x128xf32>
      %30 = vector.multi_reduction <add>, %22, %cst_23 [0] : vector<1x8x128xf32> to vector<8x128xf32>
      %31 = arith.addf %29, %30 : vector<8x128xf32>
      %c0_24 = arith.constant 0 : index
      %c0_25 = arith.constant 0 : index
      %32 = vector.load %arg7[%c0_24, %c0_25] : memref<8x128xf32, #tpu.memory_space<vmem>>, vector<8x128xf32>
      tpu.vector_store %arg7[%c0_24, %c0_25], %31 {strides = array<i32>} : memref<8x128xf32, #tpu.memory_space<vmem>>, vector<8x128xf32>,
      %c0_26 = arith.constant 0 : index
      %c0_27 = arith.constant 0 : index
      %33 = vector.load %arg8[%c0_26, %c0_27] : memref<8x128xf32, #tpu.memory_space<vmem>>, vector<8x128xf32>
      %cst_28 = arith.constant dense<0.000000e+00> : vector<8x128xf32>
      %34 = vector.multi_reduction <add>, %17, %cst_28 [0] : vector<1x8x128xf32> to vector<8x128xf32>
      %35 = arith.addf %33, %34 : vector<8x128xf32>
      %c0_29 = arith.constant 0 : index
      %c0_30 = arith.constant 0 : index
      %36 = vector.load %arg8[%c0_29, %c0_30] : memref<8x128xf32, #tpu.memory_space<vmem>>, vector<8x128xf32>
      tpu.vector_store %arg8[%c0_29, %c0_30], %35 {strides = array<i32>} : memref<8x128xf32, #tpu.memory_space<vmem>>, vector<8x128xf32>,
    } else {
    }
    %true = arith.constant true
    %10 = arith.xori %7, %true : i1
    %11 = arith.extui %10 : i1 to i32
    %cst_4 = arith.constant 0.000000e+00 : f32
    %c0_i32_5 = arith.constant 0 : i32
    %12 = arith.cmpi ne, %11, %c0_i32_5 : i32
    scf.if %12 {
      %16 = tpu.iota {dimensions = array<i32: 1>} : vector<1x8x128xi32>
      %17 = tpu.iota {dimensions = array<i32: 2>} : vector<1x8x128xi32>
      %c128_i32 = arith.constant 128 : i32
      %18 = vector.broadcast %c128_i32 : i32 to vector<1x8x128xi32>
      %19 = arith.muli %16, %18 : vector<1x8x128xi32>
      %20 = arith.addi %19, %17 : vector<1x8x128xi32>
      %c1024_i32_8 = arith.constant 1024 : i32
      %21 = arith.subi %c1024_i32_8, %5 : i32
      %22 = vector.broadcast %21 : i32 to vector<1x8x128xi32>
      %23 = arith.cmpi slt, %20, %22 : vector<1x8x128xi32>
      %c0 = arith.constant 0 : index
      %c0_9 = arith.constant 0 : index
      %c0_10 = arith.constant 0 : index
      %24 = vector.load %arg3[%c0, %c0_9, %c0_10] : memref<1x8x128xf32, #tpu.memory_space<vmem>>, vector<1x8x128xf32>
      %c0_11 = arith.constant 0 : index
      %c0_12 = arith.constant 0 : index
      %c0_13 = arith.constant 0 : index
      %25 = vector.load %arg4[%c0_11, %c0_12, %c0_13] : memref<1x8x128xf32, #tpu.memory_space<vmem>>, vector<1x8x128xf32>
      %26 = vector.broadcast %cst_4 : f32 to vector<1x8x128xf32>
      %27 = arith.cmpf ogt, %24, %26 : vector<1x8x128xf32>
      %28 = arith.andi %27, %23 : vector<1x8x128xi1>
      %cst_14 = arith.constant 0.000000e+00 : f32
      %29 = vector.broadcast %cst_14 : f32 to vector<1x8x128xf32>
      %30 = arith.select %23, %25, %29 : vector<1x8x128xi1>, vector<1x8x128xf32>
      %cst_15 = arith.constant 1.000000e+00 : f32
      %cst_16 = arith.constant 0.000000e+00 : f32
      %31 = vector.broadcast %cst_15 : f32 to vector<1x8x128xf32>
      %32 = vector.broadcast %cst_16 : f32 to vector<1x8x128xf32>
      %33 = arith.select %28, %31, %32 : vector<1x8x128xi1>, vector<1x8x128xf32>
      %cst_17 = arith.constant 0.000000e+00 : f32
      %34 = vector.broadcast %cst_17 : f32 to vector<1x8x128xf32>
      %35 = arith.select %28, %30, %34 : vector<1x8x128xi1>, vector<1x8x128xf32>
      %c0_18 = arith.constant 0 : index
      %c0_19 = arith.constant 0 : index
      %36 = vector.load %arg6[%c0_18, %c0_19] : memref<8x128xf32, #tpu.memory_space<vmem>>, vector<8x128xf32>
      %cst_20 = arith.constant dense<0.000000e+00> : vector<8x128xf32>
      %37 = vector.multi_reduction <add>, %35, %cst_20 [0] : vector<1x8x128xf32> to vector<8x128xf32>
      %38 = arith.addf %36, %37 : vector<8x128xf32>
      %c0_21 = arith.constant 0 : index
      %c0_22 = arith.constant 0 : index
      %39 = vector.load %arg6[%c0_21, %c0_22] : memref<8x128xf32, #tpu.memory_space<vmem>>, vector<8x128xf32>
      tpu.vector_store %arg6[%c0_21, %c0_22], %38 {strides = array<i32>} : memref<8x128xf32, #tpu.memory_space<vmem>>, vector<8x128xf32>,
      %c0_23 = arith.constant 0 : index
      %c0_24 = arith.constant 0 : index
      %40 = vector.load %arg7[%c0_23, %c0_24] : memref<8x128xf32, #tpu.memory_space<vmem>>, vector<8x128xf32>
      %cst_25 = arith.constant dense<0.000000e+00> : vector<8x128xf32>
      %41 = vector.multi_reduction <add>, %33, %cst_25 [0] : vector<1x8x128xf32> to vector<8x128xf32>
      %42 = arith.addf %40, %41 : vector<8x128xf32>
      %c0_26 = arith.constant 0 : index
      %c0_27 = arith.constant 0 : index
      %43 = vector.load %arg7[%c0_26, %c0_27] : memref<8x128xf32, #tpu.memory_space<vmem>>, vector<8x128xf32>
      tpu.vector_store %arg7[%c0_26, %c0_27], %42 {strides = array<i32>} : memref<8x128xf32, #tpu.memory_space<vmem>>, vector<8x128xf32>,
      %c0_28 = arith.constant 0 : index
      %c0_29 = arith.constant 0 : index
      %44 = vector.load %arg8[%c0_28, %c0_29] : memref<8x128xf32, #tpu.memory_space<vmem>>, vector<8x128xf32>
      %cst_30 = arith.constant dense<0.000000e+00> : vector<8x128xf32>
      %45 = vector.multi_reduction <add>, %30, %cst_30 [0] : vector<1x8x128xf32> to vector<8x128xf32>
      %46 = arith.addf %44, %45 : vector<8x128xf32>
      %c0_31 = arith.constant 0 : index
      %c0_32 = arith.constant 0 : index
      %47 = vector.load %arg8[%c0_31, %c0_32] : memref<8x128xf32, #tpu.memory_space<vmem>>, vector<8x128xf32>
      tpu.vector_store %arg8[%c0_31, %c0_32], %46 {strides = array<i32>} : memref<8x128xf32, #tpu.memory_space<vmem>>, vector<8x128xf32>,
    } else {
    }
    %c0_i32_6 = arith.constant 0 : i32
    %13 = arith.cmpi eq, %arg2, %c0_i32_6 : i32
    %14 = arith.extui %13 : i1 to i32
    %c0_i32_7 = arith.constant 0 : i32
    %15 = arith.cmpi ne, %14, %c0_i32_7 : i32
    scf.if %15 {
      %c0 = arith.constant 0 : index
      %c0_8 = arith.constant 0 : index
      %16 = vector.load %arg6[%c0, %c0_8] : memref<8x128xf32, #tpu.memory_space<vmem>>, vector<8x128xf32>
      %cst_9 = arith.constant dense<0.000000e+00> : vector<128xf32>
      %17 = vector.multi_reduction <add>, %16, %cst_9 [0] : vector<8x128xf32> to vector<128xf32>
      %c0_10 = arith.constant 0 : index
      %c0_11 = arith.constant 0 : index
      %18 = vector.load %arg7[%c0_10, %c0_11] : memref<8x128xf32, #tpu.memory_space<vmem>>, vector<8x128xf32>
      %cst_12 = arith.constant dense<0.000000e+00> : vector<128xf32>
      %19 = vector.multi_reduction <add>, %18, %cst_12 [0] : vector<8x128xf32> to vector<128xf32>
      %c0_13 = arith.constant 0 : index
      %c0_14 = arith.constant 0 : index
      %20 = vector.load %arg8[%c0_13, %c0_14] : memref<8x128xf32, #tpu.memory_space<vmem>>, vector<8x128xf32>
      %cst_15 = arith.constant dense<0.000000e+00> : vector<128xf32>
      %21 = vector.multi_reduction <add>, %20, %cst_15 [0] : vector<8x128xf32> to vector<128xf32>
      %22 = vector.shape_cast %17 : vector<128xf32> to vector<1x128xf32>
      %23 = vector.shape_cast %19 : vector<128xf32> to vector<1x128xf32>
      %24 = vector.shape_cast %21 : vector<128xf32> to vector<1x128xf32>
      %25 = tpu.concatenate %22, %23, %24 in 0 : vector<1x128xf32>, vector<1x128xf32>, vector<1x128xf32> -> vector<3x128xf32>
      %26 = vector.shape_cast %25 : vector<3x128xf32> to vector<1x1x3x128xf32>
      %c0_16 = arith.constant 0 : index
      %c0_17 = arith.constant 0 : index
      %c0_18 = arith.constant 0 : index
      %c0_19 = arith.constant 0 : index
      %27 = vector.load %arg5[%c0_16, %c0_17, %c0_18, %c0_19] : memref<1x1x3x128xf32, #tpu.memory_space<vmem>>, vector<1x1x3x128xf32>
      tpu.vector_store %arg5[%c0_16, %c0_17, %c0_18, %c0_19], %26 {strides = array<i32>} : memref<1x1x3x128xf32, #tpu.memory_space<vmem>>, vector<1x1x3x128xf32>,
    } else {
    }
    return
  }
  func.func @transform_0(%arg0: i32, %arg1: i32, %arg2: i32) -> (i32, i32, i32) {
    %c1_i32 = arith.constant 1 : i32
    %0 = arith.muli %arg1, %c1_i32 : i32
    %1 = arith.addi %0, %arg2 : i32
    %c0_i32 = arith.constant 0 : i32
    %c0_i32_0 = arith.constant 0 : i32
    return %arg0, %1, %c0_i32 : i32, i32, i32
  }
  func.func @transform_1(%arg0: i32, %arg1: i32, %arg2: i32) -> (i32, i32, i32) {
    %c1_i32 = arith.constant 1 : i32
    %0 = arith.muli %arg1, %c1_i32 : i32
    %1 = arith.addi %0, %arg2 : i32
    %c0_i32 = arith.constant 0 : i32
    %c0_i32_0 = arith.constant 0 : i32
    return %arg0, %1, %c0_i32 : i32, i32, i32
  }
  func.func @transform_2(%arg0: i32, %arg1: i32, %arg2: i32) -> (i32, i32, i32, i32) {
    %c0_i32 = arith.constant 0 : i32
    %c0_i32_0 = arith.constant 0 : i32
    %c0_i32_1 = arith.constant 0 : i32
    return %arg0, %arg1, %c0_i32, %c0_i32_0 : i32, i32, i32, i32
  }
}

</mosaic_0001>

<bundles_post_ra>
// kernel: tpu_custom_call.1
= control target key start
LH: loop header
LB: loop body
LE: loop exit
PB: predicated region body
PF: predicated region fallthrough
CT: control target
= control target key end

     0   :  { %7 = vsyncpa [#allocation6], 0  ;;  %s747_s0 = inlined_call_operand.hbm [shape: f32[2,8,128], index: 0, kind: input, shape index: {}]   ;;  %s748_s1 = inlined_call_operand.hbm [shape: f32[2,8,128], index: 1, kind: input, shape index: {}]   ;;  %s749_s2 = inlined_call_operand.vmem [shape: f32[2,1,3,128], index: 2, kind: output, shape index: {}]  }
   0x1   :  { %9 = vsyncpa [#allocation6 + $0x1], 0 }
   0x2   :  { %10 = vsyncpa [#allocation8], 0 }
   0x3   :  { %12 = vsyncpa [#allocation8 + $0x1], 0  ;;  %s652_s9 = smov 0   ;;  %s654_s10 = smov 0  }
   0x4   :  { %s656_s11 = smov 0   ;;  %s658_s12 = smov 0  }
   0x5   :  { %s660_s13 = smov 0   ;;  %s662_s14 = smov 0  }
   0x6 LB: > { %s445_s15 = sadd.s32 4294967295, %s634_s14   ;;  %s37_s16 = sadd.s32 1, %s630_s13  ;;  %s634_s14 = sphi %s662_s14, %s18_s14   ;;  %s630_s13 = sphi %s660_s13, %s756_s13   ;;  %s626_s12 = sphi %s658_s12, %s755_s12   ;;  %s622_s11 = sphi %s656_s11, %s754_s11   ;;  %s618_s10 = sphi %s654_s10, %s753_s10   ;;  %s614_s9 = sphi %s652_s9, %s752_s9  }
   0x7   : > { %p39_p0 = scmp.ge.s32.totalorder %s37_s16, 2  ;;  %s48_s17 = sadd.s32 1, %s622_s11 }
   0x8   : > { %p55_p1 = scmp.ne.s32.totalorder %s622_s11, %s618_s10  ;;  %p56_p2 = scmp.eq.s32.totalorder %s634_s14, 0 }
   0x9   : > { %s758_s16 = smov (%p39_p0, %s37_s16), 0  ;;  %p61_p4 = scmp.ne.s32.totalorder %s618_s10, %s614_s9 }
   0xa   : > { %p688_p3 = por %p56_p2, %p55_p1  ;;  %s43_s19 = ssub.s32 %s630_s13, %s758_s16 }
   0xb   : > { %p62_p5 = scmp.eq.s32.totalorder %s445_s15, 0  ;;  %p46_p6 = scmp.eq.s32.totalorder %s43_s19, 0 }
   0xc   : > { %p470_p8 = scmp.lt.s32.totalorder %s634_s14, 2  ;;  %s143_s22 = sand.u32 1, %s622_s11  }
   0xd   : > { %p695_p7 = por %p62_p5, %p61_p4  ;;  %s450_s23 = sshll.u32 %s630_s13, 3 }
   0xe   : > { %s701_s21 = scalar_select %p46_p6, %s622_s11, %s48_s17  }
   0xf   : > { %s449_s24 = sshll.u32 %s143_s22, 3  ;;  %s153_s27 = scalar_lea.hbm %s747_s0, %s450_s23 }
  0x10   : > { %s155_s28 = sshll.u32 %s153_s27, 4  ;;  %s147_s29 = scalar_lea.vmem [#allocation5], %s449_s24  ;;  %s156_s28 = int_to_ptr.hbm [resolvable:$true] %s155_s28 }
  0x11   : > { %s157_s30 = sshll.u32 %s147_s29, 4  ;;  %p464_p9 = pnand %p470_p8, %p688_p3  ;;  %s158_s30 = int_to_ptr.vmem [resolvable:$true] %s157_s30 }
  0x12   : > { %p453_p10 = scmp.ge.s32.totalorder %s634_s14, 1  ;;  %p183_p11 = scmp.lt.s32.totalorder %s634_s14, 3 }
  0x13   : > { %s144_s3 = scalar_lea.sflag [#allocation6], %s143_s22  ;;  %s174_s6 = scalar_lea.hbm %s748_s1, %s450_s23 }
  0x14   : > { %466 = dma.hbm_to_vmem [thread:$0]  (!%p464_p9), %s156_s28, 128, %s158_s30, %s144_s3  }
  0x15   : > { %p184_p12 = pnand %p453_p10, %p183_p11  ;;  %s176_s7 = sshll.u32 %s174_s6, 4  ;;  %s177_s7 = int_to_ptr.hbm [resolvable:$true] %s176_s7 }
  0x16   : > { %s168_s8 = scalar_lea.vmem [#allocation7], %s449_s24  ;;  %s165_s15 = scalar_lea.sflag [#allocation8], %s143_s22 }
  0x17   : > { %s178_s9 = sshll.u32 %s168_s8, 4  ;;  %187 = sbr.rel (%p184_p12) target bundleno = 49 (0x31), region = 28  ;;  %s179_s9 = int_to_ptr.vmem [resolvable:$true] %s178_s9 }
  0x18   : > { %469 = dma.hbm_to_vmem [thread:$0]  (!%p464_p9), %s177_s7, 128, %s179_s9, %s165_s15  }
  0x19   : > { %s189_s17 = sand.u32 (!%p184_p12), 1, %s618_s10  }
  0x1a   : > { %s454_s18 = sshll.u32 (!%p184_p12), %s189_s17, 3  ;;  %s190_s19 = scalar_lea.sflag (!%p184_p12), [#allocation6], %s189_s17 }
  0x1b   : > { %s193_s25 = scalar_lea.vmem (!%p184_p12), [#allocation5], %s454_s18 }
  0x1c   : > { %605 = dma.done.wait (%p695_p7), %s190_s19, 128  }
  0x1d   : > { %607 = vsyncadd (%p695_p7), %s190_s19, 4294967168  ;;  %s200_s23 = scalar_lea.sflag [#allocation8], %s189_s17  ;;  %s203_s24 = scalar_lea.vmem [#allocation7], %s454_s18 }
  0x1e   : > { %609 = dma.done.wait (%p695_p7), %s200_s23, 128  }
  0x1f   : > { %611 = vsyncadd (%p695_p7), %s200_s23, 4294967168  ;;  %v255_v0 = vld [vmem:[%s193_s25] sm:$0xff]  ;;  %v256_v1 = vld [vmem:[%s203_s24] sm:$0xff]  ;;  %v636_v3 = vmov 0.0   ;;  %p234_p13 = scmp.lt.s32.totalorder %s626_s12, 1  ;;  %vm327_vm1 = vcmask 1040384  }
  0x20   : > { %vm257_vm0 = vcmp.gt.f32.partialorder %v255_v0, 0.0  ;;  %v321_v2 = vrot.slane %v256_v1, 4  ;;  %vm329_vm2 = vcmask 1041408  }
  0x21   : > { %v258_v4 = vsel %vm257_vm0, 1.0, %v636_v3  ;;  %v259_v5 = vsel %vm257_vm0, %v256_v1, 0.0  ;;  %s760_s12 = smov (!%p234_p13, %s626_s12), 1 }
  0x22   : > { %v307_v6 = vrot.slane %v259_v5, 4  ;;  %v314_v7 = vrot.slane %v258_v4, 4  ;;  %v322_v8 = vadd.f32 %v321_v2, %v256_v1  ;;  %s456_s20 = sshll.u32 %s760_s12, 2 }
  0x23   : > { %s240_s27 = scalar_lea.vmem %s749_s2, %s456_s20 }
  0x24   : > { %v308_v9 = vadd.f32 %v307_v6, %v259_v5  ;;  %v315_v10 = vadd.f32 %v314_v7, %v258_v4  ;;  %v323_v11 = vrot.slane %v322_v8, 2 }
  0x26   : > { %v309_v12 = vrot.slane %v308_v9, 2  ;;  %v316_v13 = vrot.slane %v315_v10, 2  ;;  %v324_v14 = vadd.f32 %v323_v11, %v322_v8 }
  0x28   : > { %v310_v15 = vadd.f32 %v309_v12, %v308_v9  ;;  %v317_v16 = vadd.f32 %v316_v13, %v315_v10  ;;  %v325_v17 = vrot.slane %v324_v14, 1 }
  0x2a   : > { %v311_v18 = vrot.slane %v310_v15, 1  ;;  %v318_v19 = vrot.slane %v317_v16, 1  ;;  %v326_v20 = vadd.f32 %v325_v17, %v324_v14 }
  0x2c   : > { %v312_v21 = vadd.f32 %v311_v18, %v310_v15  ;;  %v319_v22 = vadd.f32 %v318_v19, %v317_v16 }
  0x2e   : > { %v328_v23 = vsel %vm327_vm1, %v312_v21, %v319_v22 }
  0x2f   : > { %v330_v24 = vsel %vm329_vm2, %v328_v23, %v326_v20 }
  0x30   : > { %331 = vst [vmem:[%s240_s27] sm:$0x7] %v330_v24 }
  0x31 PF: > { %s18_s14 = sadd.s32 1, %s634_s14   ;;  %s752_s9 = smov %s618_s10 }
  0x32   : > { %p15_p0 = scmp.ge.s32.totalorder %s18_s14, 4   ;;  %s753_s10 = smov %s622_s11 }
  0x33   : > { %s754_s11 = smov %s701_s21  ;;  %s755_s12 = smov %s630_s13 }
  0x34   : > { %s756_s13 = smov %s758_s16  ;;  %17 = sbr.rel (!%p15_p0) target bundleno = 6 (0x6), region = 97 }
  0x39   :  { %357 = vsyncpa [#allocation6], 1 }
  0x3a   :  { %359 = vsyncpa [#allocation6 + $0x1], 1 }
  0x3b   :  { %360 = vsyncpa [#allocation8], 1 }
  0x3c   :  { %362 = vsyncpa [#allocation8 + $0x1], 1 }

</bundles_post_ra>
